<compile_context>
chip_gen: v6e
topology: v6e:2x2x1
jax: 0.10.0
libtpu: 0.0.40
codegen_flags: <defaults>
</compile_context>

<pallas_src>
import functools

import jax
import jax.numpy as jnp
from jax import lax
from jax.experimental import pallas as pl
from jax.experimental.pallas import tpu as pltpu

LANES = 128


def _chip_config():
    """(num_tensorcores, tile_rows, vmem_limit_bytes) for the local TPU generation."""
    try:
        kind = jax.devices()[0].device_kind.lower()
    except Exception:
        kind = ""
    if "7" in kind:
        # v7x: 2 TensorCores/chip and ~3.2 TB/s HBM per TC -> bigger blocks to amortize
        # the ~0.35us per-grid-step overhead; raise the scoped-VMEM limit accordingly.
        return 2, 4096, 48 * 1024 * 1024
    # v5e / v6e: single TensorCore; HBM-bound already at (2048,128); default VMEM limit.
    return 1, 2048, None


def _row_align(*dtypes):
    # Minimum sublane multiple for the narrowest input dtype (8 f32, 16 bf16, 32 int8).
    min_item = min(jnp.dtype(d).itemsize for d in dtypes)
    return max(8, 32 // max(min_item, 1))


def _accumulate(x_ref, t_ref, acc_ref, mask, tile_rows):
    x = x_ref[...].astype(jnp.float32)
    t = t_ref[...].astype(jnp.float32)
    # Numerically-stable BCE-with-logits sharing one exp with the sigmoid:
    #   bce        = max(x, 0) - x*t + log1p(e),   e = exp(-|x|) in [0, 1]
    #   sigmoid(x) = 1/(1+e)      if x >= 0
    #              = 1 - 1/(1+e)  if x <  0
    e = jnp.exp(-jnp.abs(x))
    bce = jnp.maximum(x, 0.0) - x * t + jnp.log1p(e)
    d = 1.0 + e
    # EUP approximate reciprocal + one Newton step: ~f32 accuracy (seed error squared),
    # cheaper than the precise divide expansion; frees VPU slots on v6e/v7x.
    r0 = pl.reciprocal(d, approx=True)
    r = r0 * (2.0 - d * r0)
    p = jnp.where(x >= 0.0, r, 1.0 - r)
    if mask is not None:
        bce = jnp.where(mask, bce, 0.0)
        p = jnp.where(mask, p, 0.0)
        t = jnp.where(mask, t, 0.0)
    groups = tile_rows // 8

    def fold(v):
        # (tile_rows, 128) -> (8, 128): pure full-vreg VALU adds (no XLU, no sub-vreg
        # read-modify-write); the final 8->1 sublane reduce happens in the JAX epilogue.
        return v.reshape(groups, 8, LANES).sum(axis=0)

    acc_ref[0:8, :] += fold(bce)
    acc_ref[8:16, :] += fold(p)
    acc_ref[16:24, :] += fold(t)
    acc_ref[24:32, :] += fold(p * t)


def _partial_kernel(x_ref, t_ref, out_ref, acc_ref, *, nblocks, n_rows, tile_rows):
    c = pl.program_id(0)          # core axis (CORE_PARALLEL on v7x; size 1 otherwise)
    i = pl.program_id(1)          # streaming / reduction axis ("arbitrary")
    steps = pl.num_programs(1)
    block_id = c * steps + i      # unclamped logical block id

    @pl.when(i == 0)
    def _():
        acc_ref[...] = jnp.zeros_like(acc_ref)

    interior = block_id < nblocks - 1   # fully-valid block: no masking needed

    @pl.when(interior)
    def _():
        _accumulate(x_ref, t_ref, acc_ref, None, tile_rows)

    @pl.when(jnp.logical_not(interior))
    def _():
        # Ragged last block, or a clamped duplicate block beyond nblocks (mask is
        # all-false there): mask by global row index.
        grow = block_id * tile_rows + lax.broadcasted_iota(
            jnp.int32, (tile_rows, LANES), 0)
        _accumulate(x_ref, t_ref, acc_ref, grow < n_rows, tile_rows)

    @pl.when(i == steps - 1)
    def _():
        out_ref[...] = acc_ref[...].reshape(1, 32, LANES)


def _partial_sums(x2, t2, num_cores, tile_rows, vmem_limit):
    """x2, t2: (rows, 128) lane-major views.  Returns f32[4] = [Σbce, Σp, Σt, Σp*t]."""
    rows = x2.shape[0]
    nblocks = pl.cdiv(rows, tile_rows)
    steps_per_core = pl.cdiv(nblocks, num_cores)
    grid = (num_cores, steps_per_core)

    def in_map(c, i):
        # Clamp so redundant trailing (fully-masked) iterations re-read a valid block.
        return (jnp.minimum(c * steps_per_core + i, nblocks - 1), 0)

    if num_cores > 1:
        # Guarantee the 2-TensorCore split on v7x (plain "parallel" does not).
        dims = (getattr(pltpu, "CORE_PARALLEL", "parallel"),
                getattr(pltpu, "ARBITRARY", "arbitrary"))
    else:
        dims = ("arbitrary", "arbitrary")

    kernel = functools.partial(
        _partial_kernel, nblocks=nblocks, n_rows=rows, tile_rows=tile_rows)

    partials = pl.pallas_call(
        kernel,
        out_shape=jax.ShapeDtypeStruct((num_cores, 32, LANES), jnp.float32),
        grid_spec=pltpu.PrefetchScalarGridSpec(
            num_scalar_prefetch=0,
            grid=grid,
            in_specs=[
                pl.BlockSpec((tile_rows, LANES), in_map),
                pl.BlockSpec((tile_rows, LANES), in_map),
            ],
            out_specs=pl.BlockSpec((1, 32, LANES), lambda c, i: (c, 0, 0)),
            scratch_shapes=[pltpu.VMEM((32, LANES), jnp.float32)],
        ),
        compiler_params=pltpu.CompilerParams(
            dimension_semantics=dims,
            vmem_limit_bytes=vmem_limit,
        ),
    )(x2, t2)
    # (num_cores, 32, 128) -> per-quantity scalars; tiny reduce done in plain JAX.
    return partials.reshape(num_cores, 4, 8, LANES).sum(axis=(0, 2, 3))


def bce_dice_loss(inputs, targets, smooth=1.0):
    """inputs: logits, targets: binary masks; any identical shape (e.g. NCHW)."""
    assert inputs.shape == targets.shape
    n_valid = inputs.size
    x_flat = inputs.reshape(-1)
    t_flat = targets.reshape(-1)

    num_cores, tile_rows, vmem_limit = _chip_config()

    align = _row_align(inputs.dtype, targets.dtype)
    rows_k = (n_valid // (align * LANES)) * align   # rows handled by the kernel
    n_kernel = rows_k * LANES
    n_tail = n_valid - n_kernel                      # < align*128 elements, pure JAX

    sums = jnp.zeros((4,), jnp.float32)
    if rows_k > 0:
        if n_tail:
            # Lane-misaligned sizes: kernel consumes the aligned prefix, the tiny tail
            # is folded into the JAX epilogue below (no full pad/concatenate).
            x2 = x_flat[:n_kernel].reshape(rows_k, LANES)
            t2 = t_flat[:n_kernel].reshape(rows_k, LANES)
        else:
            # Common case: contiguous reshape is a free bitcast, zero extra HBM traffic.
            x2 = x_flat.reshape(rows_k, LANES)
            t2 = t_flat.reshape(rows_k, LANES)
        tr = min(tile_rows, rows_k)                  # don't DMA mostly-empty blocks
        sums = sums + _partial_sums(x2, t2, num_cores, tr, vmem_limit)

    if n_tail:
        xt = x_flat[n_kernel:].astype(jnp.float32)
        tt = t_flat[n_kernel:].astype(jnp.float32)
        e = jnp.exp(-jnp.abs(xt))
        bce_t = jnp.maximum(xt, 0.0) - xt * tt + jnp.log1p(e)
        p_t = jnp.where(xt >= 0.0, 1.0 / (1.0 + e), e / (1.0 + e))
        sums = sums + jnp.stack(
            [bce_t.sum(), p_t.sum(), tt.sum(), (p_t * tt).sum()])

    s_bce, s_p, s_t, s_int = sums[0], sums[1], sums[2], sums[3]
    bce_mean = s_bce / jnp.float32(n_valid)
    dice = (2.0 * s_int + smooth) / (s_p + s_t + smooth)
    return bce_mean + (1.0 - dice)


def _reference(inputs, targets, smooth=1.0):
    x = inputs.astype(jnp.float32).reshape(-1)
    t = targets.astype(jnp.float32).reshape(-1)
    bce = jnp.mean(jnp.maximum(x, 0.0) - x * t + jnp.log1p(jnp.exp(-jnp.abs(x))))
    p = jax.nn.sigmoid(x)
    inter = jnp.sum(p * t)
    dice = (2.0 * inter + smooth) / (jnp.sum(p) + jnp.sum(t) + smooth)
    return bce + (1.0 - dice)


if __name__ == "__main__":
    key = jax.random.PRNGKey(0)
    k1, k2, k3, k4 = jax.random.split(key, 4)

    # 1) Lane-aligned f32 NCHW (batch=2, channels=4, spatial=16x16).
    logits = jax.random.normal(k1, (2, 4, 16, 16), dtype=jnp.float32)
    masks = (jax.random.uniform(k2, (2, 4, 16, 16)) > 0.5).astype(jnp.float32)
    loss = jax.block_until_ready(bce_dice_loss(logits, masks))
    ref = jax.block_until_ready(_reference(logits, masks))
    assert jnp.allclose(loss, ref, rtol=1e-5, atol=1e-5), (loss, ref)

    # 2) Lane-misaligned numel: exercises the aligned-prefix kernel + JAX tail path.
    logits_u = jax.random.normal(k3, (2, 3, 13, 17), dtype=jnp.float32)
    masks_u = (jax.random.uniform(k4, (2, 3, 13, 17)) > 0.5).astype(jnp.float32)
    loss_u = jax.block_until_ready(bce_dice_loss(logits_u, masks_u))
    ref_u = jax.block_until_ready(_reference(logits_u, masks_u))
    assert jnp.allclose(loss_u, ref_u, rtol=1e-5, atol=1e-5), (loss_u, ref_u)

    # 3) bf16 inputs: halves the HBM streams; kernel casts to f32 inside VMEM.
    loss_b = jax.block_until_ready(
        bce_dice_loss(logits.astype(jnp.bfloat16), masks.astype(jnp.bfloat16)))
    ref_b = jax.block_until_ready(
        _reference(logits.astype(jnp.bfloat16), masks.astype(jnp.bfloat16)))
    assert jnp.allclose(loss_b, ref_b, rtol=1e-5, atol=1e-5), (loss_b, ref_b)

    print("KERNEL_OK")
</pallas_src>

<mosaic_0001>
module attributes {stable_mosaic.version = 11 : i64} {
  func.func @_partial_kernel(%arg0: i32, %arg1: i32, %arg2: memref<16x128xf32, #tpu.memory_space<vmem>>, %arg3: memref<16x128xf32, #tpu.memory_space<vmem>>, %arg4: memref<1x32x128xf32, #tpu.memory_space<vmem>>, %arg5: memref<32x128xf32, #tpu.memory_space<vmem>>) attributes {dimension_semantics = [#tpu.dimension_semantics<arbitrary>, #tpu.dimension_semantics<arbitrary>], iteration_bounds = array<i64: 1, 1>, scalar_prefetch = 0 : i64, scratch_operands = 1 : i64, tpu.core_type = #tpu.core_type<tc>, window_params = [{transform_indices = @transform_0, window_bounds = array<i64: 16, 128>}, {transform_indices = @transform_1, window_bounds = array<i64: 16, 128>}, {transform_indices = @transform_2, window_bounds = array<i64: 1, 32, 128>}]} {
    %c1_i32 = arith.constant 1 : i32
    %0 = arith.muli %arg0, %c1_i32 : i32
    %1 = arith.addi %0, %arg1 : i32
    %c0_i32 = arith.constant 0 : i32
    %2 = arith.cmpi eq, %arg1, %c0_i32 : i32
    %3 = arith.extui %2 : i1 to i32
    %c0_i32_0 = arith.constant 0 : i32
    %4 = arith.cmpi ne, %3, %c0_i32_0 : i32
    scf.if %4 {
      %cst = arith.constant 0.000000e+00 : f32
      %14 = vector.broadcast %cst : f32 to vector<32x128xf32>
      %c0 = arith.constant 0 : index
      %c0_6 = arith.constant 0 : index
      %15 = vector.load %arg5[%c0, %c0_6] : memref<32x128xf32, #tpu.memory_space<vmem>>, vector<32x128xf32>
      tpu.vector_store %arg5[%c0, %c0_6], %14 {strides = array<i32>} : memref<32x128xf32, #tpu.memory_space<vmem>>, vector<32x128xf32>,
    } else {
    }
    %c0_i32_1 = arith.constant 0 : i32
    %5 = arith.cmpi slt, %1, %c0_i32_1 : i32
    %6 = arith.extui %5 : i1 to i32
    %c0_i32_2 = arith.constant 0 : i32
    %7 = arith.cmpi ne, %6, %c0_i32_2 : i32
    scf.if %7 {
      %c0 = arith.constant 0 : index
      %c0_6 = arith.constant 0 : index
      %14 = vector.load %arg2[%c0, %c0_6] : memref<16x128xf32, #tpu.memory_space<vmem>>, vector<16x128xf32>
      %c0_7 = arith.constant 0 : index
      %c0_8 = arith.constant 0 : index
      %15 = vector.load %arg3[%c0_7, %c0_8] : memref<16x128xf32, #tpu.memory_space<vmem>>, vector<16x128xf32>
      %16 = math.absf %14 : vector<16x128xf32>
      %cst = arith.constant 0.000000e+00 : f32
      %17 = vector.broadcast %cst : f32 to vector<16x128xf32>
      %18 = arith.subf %17, %16 : vector<16x128xf32>
      %19 = math.exp %18 : vector<16x128xf32>
      %cst_9 = arith.constant 0.000000e+00 : f32
      %20 = vector.broadcast %cst_9 : f32 to vector<16x128xf32>
      %21 = arith.maximumf %14, %20 : vector<16x128xf32>
      %22 = arith.mulf %14, %15 : vector<16x128xf32>
      %23 = arith.subf %21, %22 : vector<16x128xf32>
      %24 = math.log1p %19 : vector<16x128xf32>
      %25 = arith.addf %23, %24 : vector<16x128xf32>
      %cst_10 = arith.constant 1.000000e+00 : f32
      %26 = vector.broadcast %cst_10 : f32 to vector<16x128xf32>
      %27 = arith.addf %26, %19 : vector<16x128xf32>
      %28 = tpu.reciprocal %27 {approx = true} : vector<16x128xf32> -> vector<16x128xf32>
      %29 = arith.mulf %27, %28 : vector<16x128xf32>
      %cst_11 = arith.constant 2.000000e+00 : f32
      %30 = vector.broadcast %cst_11 : f32 to vector<16x128xf32>
      %31 = arith.subf %30, %29 : vector<16x128xf32>
      %32 = arith.mulf %28, %31 : vector<16x128xf32>
      %cst_12 = arith.constant 0.000000e+00 : f32
      %33 = vector.broadcast %cst_12 : f32 to vector<16x128xf32>
      %34 = arith.cmpf oge, %14, %33 : vector<16x128xf32>
      %cst_13 = arith.constant 1.000000e+00 : f32
      %35 = vector.broadcast %cst_13 : f32 to vector<16x128xf32>
      %36 = arith.subf %35, %32 : vector<16x128xf32>
      %37 = arith.select %34, %32, %36 : vector<16x128xi1>, vector<16x128xf32>
      %c0_14 = arith.constant 0 : index
      %c0_15 = arith.constant 0 : index
      %38 = vector.load %arg5[%c0_14, %c0_15] : memref<32x128xf32, #tpu.memory_space<vmem>>, vector<8x128xf32>
      %39 = vector.shape_cast %25 : vector<16x128xf32> to vector<2x8x128xf32>
      %cst_16 = arith.constant dense<0.000000e+00> : vector<8x128xf32>
      %40 = vector.multi_reduction <add>, %39, %cst_16 [0] : vector<2x8x128xf32> to vector<8x128xf32>
      %41 = arith.addf %38, %40 : vector<8x128xf32>
      %c0_17 = arith.constant 0 : index
      %c0_18 = arith.constant 0 : index
      %42 = vector.load %arg5[%c0_17, %c0_18] : memref<32x128xf32, #tpu.memory_space<vmem>>, vector<8x128xf32>
      tpu.vector_store %arg5[%c0_17, %c0_18], %41 {strides = array<i32>} : memref<32x128xf32, #tpu.memory_space<vmem>>, vector<8x128xf32>,
      %c8 = arith.constant 8 : index
      %c0_19 = arith.constant 0 : index
      %43 = vector.load %arg5[%c8, %c0_19] : memref<32x128xf32, #tpu.memory_space<vmem>>, vector<8x128xf32>
      %44 = vector.shape_cast %37 : vector<16x128xf32> to vector<2x8x128xf32>
      %cst_20 = arith.constant dense<0.000000e+00> : vector<8x128xf32>
      %45 = vector.multi_reduction <add>, %44, %cst_20 [0] : vector<2x8x128xf32> to vector<8x128xf32>
      %46 = arith.addf %43, %45 : vector<8x128xf32>
      %c8_21 = arith.constant 8 : index
      %c0_22 = arith.constant 0 : index
      %47 = vector.load %arg5[%c8_21, %c0_22] : memref<32x128xf32, #tpu.memory_space<vmem>>, vector<8x128xf32>
      tpu.vector_store %arg5[%c8_21, %c0_22], %46 {strides = array<i32>} : memref<32x128xf32, #tpu.memory_space<vmem>>, vector<8x128xf32>,
      %c16 = arith.constant 16 : index
      %c0_23 = arith.constant 0 : index
      %48 = vector.load %arg5[%c16, %c0_23] : memref<32x128xf32, #tpu.memory_space<vmem>>, vector<8x128xf32>
      %49 = vector.shape_cast %15 : vector<16x128xf32> to vector<2x8x128xf32>
      %cst_24 = arith.constant dense<0.000000e+00> : vector<8x128xf32>
      %50 = vector.multi_reduction <add>, %49, %cst_24 [0] : vector<2x8x128xf32> to vector<8x128xf32>
      %51 = arith.addf %48, %50 : vector<8x128xf32>
      %c16_25 = arith.constant 16 : index
      %c0_26 = arith.constant 0 : index
      %52 = vector.load %arg5[%c16_25, %c0_26] : memref<32x128xf32, #tpu.memory_space<vmem>>, vector<8x128xf32>
      tpu.vector_store %arg5[%c16_25, %c0_26], %51 {strides = array<i32>} : memref<32x128xf32, #tpu.memory_space<vmem>>, vector<8x128xf32>,
      %c24 = arith.constant 24 : index
      %c0_27 = arith.constant 0 : index
      %53 = vector.load %arg5[%c24, %c0_27] : memref<32x128xf32, #tpu.memory_space<vmem>>, vector<8x128xf32>
      %54 = arith.mulf %37, %15 : vector<16x128xf32>
      %55 = vector.shape_cast %54 : vector<16x128xf32> to vector<2x8x128xf32>
      %cst_28 = arith.constant dense<0.000000e+00> : vector<8x128xf32>
      %56 = vector.multi_reduction <add>, %55, %cst_28 [0] : vector<2x8x128xf32> to vector<8x128xf32>
      %57 = arith.addf %53, %56 : vector<8x128xf32>
      %c24_29 = arith.constant 24 : index
      %c0_30 = arith.constant 0 : index
      %58 = vector.load %arg5[%c24_29, %c0_30] : memref<32x128xf32, #tpu.memory_space<vmem>>, vector<8x128xf32>
      tpu.vector_store %arg5[%c24_29, %c0_30], %57 {strides = array<i32>} : memref<32x128xf32, #tpu.memory_space<vmem>>, vector<8x128xf32>,
    } else {
    }
    %true = arith.constant true
    %8 = arith.xori %5, %true : i1
    %9 = arith.extui %8 : i1 to i32
    %c0_i32_3 = arith.constant 0 : i32
    %10 = arith.cmpi ne, %9, %c0_i32_3 : i32
    scf.if %10 {
      %c16_i32 = arith.constant 16 : i32
      %14 = arith.muli %1, %c16_i32 : i32
      %15 = tpu.iota {dimensions = array<i32: 0>} : vector<16x128xi32>
      %16 = vector.broadcast %14 : i32 to vector<16x128xi32>
      %17 = arith.addi %16, %15 : vector<16x128xi32>
      %c16_i32_6 = arith.constant 16 : i32
      %18 = vector.broadcast %c16_i32_6 : i32 to vector<16x128xi32>
      %19 = arith.cmpi slt, %17, %18 : vector<16x128xi32>
      %c0 = arith.constant 0 : index
      %c0_7 = arith.constant 0 : index
      %20 = vector.load %arg2[%c0, %c0_7] : memref<16x128xf32, #tpu.memory_space<vmem>>, vector<16x128xf32>
      %c0_8 = arith.constant 0 : index
      %c0_9 = arith.constant 0 : index
      %21 = vector.load %arg3[%c0_8, %c0_9] : memref<16x128xf32, #tpu.memory_space<vmem>>, vector<16x128xf32>
      %22 = math.absf %20 : vector<16x128xf32>
      %cst = arith.constant 0.000000e+00 : f32
      %23 = vector.broadcast %cst : f32 to vector<16x128xf32>
      %24 = arith.subf %23, %22 : vector<16x128xf32>
      %25 = math.exp %24 : vector<16x128xf32>
      %cst_10 = arith.constant 0.000000e+00 : f32
      %26 = vector.broadcast %cst_10 : f32 to vector<16x128xf32>
      %27 = arith.maximumf %20, %26 : vector<16x128xf32>
      %28 = arith.mulf %20, %21 : vector<16x128xf32>
      %29 = arith.subf %27, %28 : vector<16x128xf32>
      %30 = math.log1p %25 : vector<16x128xf32>
      %31 = arith.addf %29, %30 : vector<16x128xf32>
      %cst_11 = arith.constant 1.000000e+00 : f32
      %32 = vector.broadcast %cst_11 : f32 to vector<16x128xf32>
      %33 = arith.addf %32, %25 : vector<16x128xf32>
      %34 = tpu.reciprocal %33 {approx = true} : vector<16x128xf32> -> vector<16x128xf32>
      %35 = arith.mulf %33, %34 : vector<16x128xf32>
      %cst_12 = arith.constant 2.000000e+00 : f32
      %36 = vector.broadcast %cst_12 : f32 to vector<16x128xf32>
      %37 = arith.subf %36, %35 : vector<16x128xf32>
      %38 = arith.mulf %34, %37 : vector<16x128xf32>
      %cst_13 = arith.constant 0.000000e+00 : f32
      %39 = vector.broadcast %cst_13 : f32 to vector<16x128xf32>
      %40 = arith.cmpf oge, %20, %39 : vector<16x128xf32>
      %cst_14 = arith.constant 1.000000e+00 : f32
      %41 = vector.broadcast %cst_14 : f32 to vector<16x128xf32>
      %42 = arith.subf %41, %38 : vector<16x128xf32>
      %43 = arith.select %40, %38, %42 : vector<16x128xi1>, vector<16x128xf32>
      %cst_15 = arith.constant 0.000000e+00 : f32
      %44 = vector.broadcast %cst_15 : f32 to vector<16x128xf32>
      %45 = arith.select %19, %31, %44 : vector<16x128xi1>, vector<16x128xf32>
      %cst_16 = arith.constant 0.000000e+00 : f32
      %46 = vector.broadcast %cst_16 : f32 to vector<16x128xf32>
      %47 = arith.select %19, %43, %46 : vector<16x128xi1>, vector<16x128xf32>
      %cst_17 = arith.constant 0.000000e+00 : f32
      %48 = vector.broadcast %cst_17 : f32 to vector<16x128xf32>
      %49 = arith.select %19, %21, %48 : vector<16x128xi1>, vector<16x128xf32>
      %c0_18 = arith.constant 0 : index
      %c0_19 = arith.constant 0 : index
      %50 = vector.load %arg5[%c0_18, %c0_19] : memref<32x128xf32, #tpu.memory_space<vmem>>, vector<8x128xf32>
      %51 = vector.shape_cast %45 : vector<16x128xf32> to vector<2x8x128xf32>
      %cst_20 = arith.constant dense<0.000000e+00> : vector<8x128xf32>
      %52 = vector.multi_reduction <add>, %51, %cst_20 [0] : vector<2x8x128xf32> to vector<8x128xf32>
      %53 = arith.addf %50, %52 : vector<8x128xf32>
      %c0_21 = arith.constant 0 : index
      %c0_22 = arith.constant 0 : index
      %54 = vector.load %arg5[%c0_21, %c0_22] : memref<32x128xf32, #tpu.memory_space<vmem>>, vector<8x128xf32>
      tpu.vector_store %arg5[%c0_21, %c0_22], %53 {strides = array<i32>} : memref<32x128xf32, #tpu.memory_space<vmem>>, vector<8x128xf32>,
      %c8 = arith.constant 8 : index
      %c0_23 = arith.constant 0 : index
      %55 = vector.load %arg5[%c8, %c0_23] : memref<32x128xf32, #tpu.memory_space<vmem>>, vector<8x128xf32>
      %56 = vector.shape_cast %47 : vector<16x128xf32> to vector<2x8x128xf32>
      %cst_24 = arith.constant dense<0.000000e+00> : vector<8x128xf32>
      %57 = vector.multi_reduction <add>, %56, %cst_24 [0] : vector<2x8x128xf32> to vector<8x128xf32>
      %58 = arith.addf %55, %57 : vector<8x128xf32>
      %c8_25 = arith.constant 8 : index
      %c0_26 = arith.constant 0 : index
      %59 = vector.load %arg5[%c8_25, %c0_26] : memref<32x128xf32, #tpu.memory_space<vmem>>, vector<8x128xf32>
      tpu.vector_store %arg5[%c8_25, %c0_26], %58 {strides = array<i32>} : memref<32x128xf32, #tpu.memory_space<vmem>>, vector<8x128xf32>,
      %c16 = arith.constant 16 : index
      %c0_27 = arith.constant 0 : index
      %60 = vector.load %arg5[%c16, %c0_27] : memref<32x128xf32, #tpu.memory_space<vmem>>, vector<8x128xf32>
      %61 = vector.shape_cast %49 : vector<16x128xf32> to vector<2x8x128xf32>
      %cst_28 = arith.constant dense<0.000000e+00> : vector<8x128xf32>
      %62 = vector.multi_reduction <add>, %61, %cst_28 [0] : vector<2x8x128xf32> to vector<8x128xf32>
      %63 = arith.addf %60, %62 : vector<8x128xf32>
      %c16_29 = arith.constant 16 : index
      %c0_30 = arith.constant 0 : index
      %64 = vector.load %arg5[%c16_29, %c0_30] : memref<32x128xf32, #tpu.memory_space<vmem>>, vector<8x128xf32>
      tpu.vector_store %arg5[%c16_29, %c0_30], %63 {strides = array<i32>} : memref<32x128xf32, #tpu.memory_space<vmem>>, vector<8x128xf32>,
      %c24 = arith.constant 24 : index
      %c0_31 = arith.constant 0 : index
      %65 = vector.load %arg5[%c24, %c0_31] : memref<32x128xf32, #tpu.memory_space<vmem>>, vector<8x128xf32>
      %66 = arith.mulf %47, %49 : vector<16x128xf32>
      %67 = vector.shape_cast %66 : vector<16x128xf32> to vector<2x8x128xf32>
      %cst_32 = arith.constant dense<0.000000e+00> : vector<8x128xf32>
      %68 = vector.multi_reduction <add>, %67, %cst_32 [0] : vector<2x8x128xf32> to vector<8x128xf32>
      %69 = arith.addf %65, %68 : vector<8x128xf32>
      %c24_33 = arith.constant 24 : index
      %c0_34 = arith.constant 0 : index
      %70 = vector.load %arg5[%c24_33, %c0_34] : memref<32x128xf32, #tpu.memory_space<vmem>>, vector<8x128xf32>
      tpu.vector_store %arg5[%c24_33, %c0_34], %69 {strides = array<i32>} : memref<32x128xf32, #tpu.memory_space<vmem>>, vector<8x128xf32>,
    } else {
    }
    %c0_i32_4 = arith.constant 0 : i32
    %11 = arith.cmpi eq, %arg1, %c0_i32_4 : i32
    %12 = arith.extui %11 : i1 to i32
    %c0_i32_5 = arith.constant 0 : i32
    %13 = arith.cmpi ne, %12, %c0_i32_5 : i32
    scf.if %13 {
      %c0 = arith.constant 0 : index
      %c0_6 = arith.constant 0 : index
      %14 = vector.load %arg5[%c0, %c0_6] : memref<32x128xf32, #tpu.memory_space<vmem>>, vector<32x128xf32>
      %15 = vector.shape_cast %14 : vector<32x128xf32> to vector<1x32x128xf32>
      %c0_7 = arith.constant 0 : index
      %c0_8 = arith.constant 0 : index
      %c0_9 = arith.constant 0 : index
      %16 = vector.load %arg4[%c0_7, %c0_8, %c0_9] : memref<1x32x128xf32, #tpu.memory_space<vmem>>, vector<1x32x128xf32>
      tpu.vector_store %arg4[%c0_7, %c0_8, %c0_9], %15 {strides = array<i32>} : memref<1x32x128xf32, #tpu.memory_space<vmem>>, vector<1x32x128xf32>,
    } else {
    }
    return
  }
  func.func @transform_0(%arg0: i32, %arg1: i32) -> (i32, i32) {
    %c1_i32 = arith.constant 1 : i32
    %0 = arith.muli %arg0, %c1_i32 : i32
    %1 = arith.addi %0, %arg1 : i32
    %c0_i32 = arith.constant 0 : i32
    %2 = arith.minsi %1, %c0_i32 : i32
    %c0_i32_0 = arith.constant 0 : i32
    %c0_i32_1 = arith.constant 0 : i32
    return %2, %c0_i32_0 : i32, i32
  }
  func.func @transform_1(%arg0: i32, %arg1: i32) -> (i32, i32) {
    %c1_i32 = arith.constant 1 : i32
    %0 = arith.muli %arg0, %c1_i32 : i32
    %1 = arith.addi %0, %arg1 : i32
    %c0_i32 = arith.constant 0 : i32
    %2 = arith.minsi %1, %c0_i32 : i32
    %c0_i32_0 = arith.constant 0 : i32
    %c0_i32_1 = arith.constant 0 : i32
    return %2, %c0_i32_0 : i32, i32
  }
  func.func @transform_2(%arg0: i32, %arg1: i32) -> (i32, i32, i32) {
    %c0_i32 = arith.constant 0 : i32
    %c0_i32_0 = arith.constant 0 : i32
    %c0_i32_1 = arith.constant 0 : i32
    return %arg0, %c0_i32, %c0_i32_0 : i32, i32, i32
  }
}

</mosaic_0001>

<bundles_post_ra>
// kernel: tpu_custom_call.1
= control target key start
LH: loop header
LB: loop body
LE: loop exit
PB: predicated region body
PF: predicated region fallthrough
CT: control target
= control target key end

     0   :  { %7 = vsyncpa [#allocation4], 0  ;;  %s390_s0 = inlined_call_operand.hbm [shape: f32[16,128], index: 0, kind: input, shape index: {}]   ;;  %s391_s1 = inlined_call_operand.hbm [shape: f32[16,128], index: 1, kind: input, shape index: {}]   ;;  %s392_s2 = inlined_call_operand.hbm [shape: f32[1,32,128], index: 2, kind: output, shape index: {}]  }
   0x1   :  { %8 = vsyncpa [#allocation7], 0 }
   0x2   :  { %9 = vsyncpa [#allocation5], 0  ;;  %s352_s9 = smov [#allocation3]  }
   0x3   :  { %s21_s10 = sshll.u32 %s352_s9, 4  ;;  %s22_s10 = int_to_ptr.vmem [resolvable:$true] %s21_s10 }
   0x4   :  { %s294_s11 = scalar_lea.vmem %s22_s10, 256  ;;  %p299_p1 = scmp.lt.s32.totalorder %s22_s10, %s22_s10 }
   0x5   :  { %p295_p0 = scmp.ne.s32.totalorder %s22_s10, %s294_s11  ;;  %p300_p2 = scmp.lt.s32.totalorder %s294_s11, %s294_s11 }
   0x7   :  { %p301_p3 = por %p300_p2, %p299_p1 }
   0x9   :  { %p302_p4 = pnand %p301_p3, %p295_p0 }
   0xb   :  { %305 = shalt.err (!%p302_p4)
}
   0xc   :  { %s353_s12 = smov 128   ;;  %s354_s13 = smov 8  }
   0xd   :  { %27 = dma.hbm_to_vmem [thread:$0]  %s390_s0, 256, %s22_s10, [#allocation4], %s353_s12, %s353_s12, %s354_s13  }
   0xe   :  { %s355_s16 = smov [#allocation6]  }
   0xf   :  { %s39_s17 = sshll.u32 %s355_s16, 4  ;;  %s40_s17 = int_to_ptr.vmem [resolvable:$true] %s39_s17 }
  0x10   :  { %s314_s18 = scalar_lea.vmem %s40_s17, 256  ;;  %p319_p6 = scmp.lt.s32.totalorder %s40_s17, %s40_s17 }
  0x11   :  { %p315_p5 = scmp.ne.s32.totalorder %s40_s17, %s314_s18  ;;  %p320_p7 = scmp.lt.s32.totalorder %s314_s18, %s314_s18 }
  0x13   :  { %p321_p8 = por %p320_p7, %p319_p6 }
  0x15   :  { %p322_p9 = pnand %p321_p8, %p315_p5 }
  0x17   :  { %325 = shalt.err (!%p322_p9)
}
  0x18   :  { %45 = dma.hbm_to_vmem [thread:$0]  %s391_s1, 256, %s40_s17, [#allocation7], %s353_s12, %s353_s12, %s354_s13  }
  0x19   :  { %346 = dma.done.wait [#allocation4], 256  }
  0x1a   :  { %347 = vsyncadd [#allocation4], 4294967040 }
  0x1b   :  { %348 = dma.done.wait [#allocation7], 256  }
  0x1c   :  { %349 = vsyncadd [#allocation7], 4294967040  ;;  %v158_v0 = vld [vmem:[#allocation3] sm:$0xff]  ;;  %v159_v1 = vld [vmem:[#allocation3 + $0x8] sm:$0xff]  ;;  %s356_s0 = smov [#allocation8]  }
  0x1d   :  { %v162_v2 = vand.u32 2147483647, %v158_v0  ;;  %v163_v3 = vand.u32 2147483647, %v159_v1  ;;  %v160_v4 = vld [vmem:[#allocation6] sm:$0xff]  ;;  %v161_v5 = vld [vmem:[#allocation6 + $0x8] sm:$0xff] }
  0x1e   :  { %v227_v8 = vadd.f32 %v161_v5, %v160_v4  ;;  %v170_v18 = vmax.f32 %v158_v0, 0.0  ;;  %v172_v19 = vmul.f32 %v160_v4, %v158_v0  ;;  %v171_v22 = vmax.f32 %v159_v1, 0.0  ;;  %s252_s1 = sshll.u32 %s356_s0, 4  ;;  %s253_s1 = int_to_ptr.vmem [resolvable:$true] %s252_s1 }
  0x1f   :  { %v164_v6 = vsub.f32 0.0, %v162_v2  ;;  %v165_v7 = vsub.f32 0.0, %v163_v3  ;;  %v173_v23 = vmul.f32 %v161_v5, %v159_v1  ;;  %vm206_vm2 = vcmp.ge.f32.partialorder %v158_v0, 0.0  ;;  %s326_s21 = scalar_lea.vmem %s253_s1, 512  ;;  %p331_p11 = scmp.lt.s32.totalorder %s253_s1, %s253_s1 }
  0x20   :  { %245 = vst [vmem:[#allocation8 + $0x10] sm:$0xff] %v227_v8  ;;  %v174_v27 = vsub.f32 %v170_v18, %v172_v19  ;;  %vm207_vm3 = vcmp.ge.f32.partialorder %v159_v1, 0.0  ;;  %p327_p10 = scmp.ne.s32.totalorder %s253_s1, %s326_s21  ;;  %p332_p12 = scmp.lt.s32.totalorder %s326_s21, %s326_s21 }
  0x21   :  { %v166_v9 = vmul.f32 1.442695, %v164_v6  ;;  %v168_v10 = vmul.f32 1.442695, %v165_v7  ;;  %v175_v30 = vsub.f32 %v171_v22, %v173_v23 }
  0x22   :  { %p333_p13 = por %p332_p12, %p331_p11 }
  0x23   :  { %274 = vpow2.f32 %v166_v9 }
  0x24   :  { %276 = vpow2.f32 %v168_v10  ;;  %p334_p0 = pnand %p333_p13, %p327_p10 }
  0x30   :  { %v275_v11 = vpop.eup %274 }
  0x31   :  { %v277_v12 = vpop.eup %276  ;;  %v176_v13 = vadd.f32 1.0, %v275_v11  ;;  %v179_v15 = vmul.f32 -0.5, %v275_v11  ;;  %v182_v20 = vand.u32 2147483647, %v275_v11 }
  0x32   :  { %v185_v14 = vadd.f32 1.0, %v277_v12  ;;  %v188_v16 = vmul.f32 -0.5, %v277_v12  ;;  %v191_v24 = vand.u32 2147483647, %v277_v12 }
  0x33   :  { %278 = vlog2.f32 %v176_v13  ;;  %v180_v17 = vadd.f32 1.0, %v179_v15  ;;  %vm183_vm0 = vcmp.lt.f32.partialorder %v182_v20, 0.0004427343 }
  0x34   :  { %280 = vlog2.f32 %v185_v14  ;;  %v189_v21 = vadd.f32 1.0, %v188_v16  ;;  %vm192_vm1 = vcmp.lt.f32.partialorder %v191_v24, 0.0004427343 }
  0x35   :  { %282 = vrcp.f32 %v176_v13  ;;  %v181_v25 = vmul.f32 %v275_v11, %v180_v17 }
  0x36   :  { %284 = vrcp.f32 %v185_v14  ;;  %v190_v28 = vmul.f32 %v277_v12, %v189_v21 }
  0x40   :  { %v279_v26 = vpop.eup %278 }
  0x41   :  { %v281_v29 = vpop.eup %280  ;;  %v178_v31 = vmul.f32 0.6931472, %v279_v26 }
  0x42   :  { %v283_v32 = vpop.eup %282  ;;  %v187_v33 = vmul.f32 0.6931472, %v281_v29 }
  0x43   :  { %v285_v34 = vpop.eup %284  ;;  %v184_v35 = vsel %vm183_vm0, %v181_v25, %v178_v31  ;;  %v200_v36 = vmul.f32 %v283_v32, %v176_v13 }
  0x44   :  { %v193_v37 = vsel %vm192_vm1, %v190_v28, %v187_v33  ;;  %v194_v38 = vadd.f32 %v184_v35, %v174_v27  ;;  %v201_v39 = vmul.f32 %v285_v34, %v185_v14 }
  0x45   :  { %v195_v40 = vadd.f32 %v193_v37, %v175_v30  ;;  %v202_v41 = vsub.f32 2.0, %v200_v36 }
  0x46   :  { %v203_v42 = vsub.f32 2.0, %v201_v39 }
  0x47   :  { %v219_v43 = vadd.f32 %v195_v40, %v194_v38  ;;  %v204_v44 = vmul.f32 %v283_v32, %v202_v41 }
  0x48   :  { %v205_v45 = vmul.f32 %v285_v34, %v203_v42 }
  0x49   :  { %243 = vst [vmem:[#allocation8] sm:$0xff] %v219_v43  ;;  %v208_v46 = vsub.f32 1.0, %v204_v44 }
  0x4a   :  { %v209_v47 = vsub.f32 1.0, %v205_v45 }
  0x4b   :  { %v210_v48 = vsel %vm206_vm2, %v204_v44, %v208_v46 }
  0x4c   :  { %v211_v49 = vsel %vm207_vm3, %v205_v45, %v209_v47  ;;  %v231_v50 = vmul.f32 %v210_v48, %v160_v4 }
  0x4d   :  { %v223_v51 = vadd.f32 %v211_v49, %v210_v48  ;;  %v232_v52 = vmul.f32 %v211_v49, %v161_v5 }
  0x4f   :  { %244 = vst [vmem:[#allocation8 + $0x8] sm:$0xff] %v223_v51  ;;  %v233_v53 = vadd.f32 %v232_v52, %v231_v50 }
  0x51   :  { %246 = vst [vmem:[#allocation8 + $0x18] sm:$0xff] %v233_v53 }
  0x52   :  { %337 = shalt.err (!%p334_p0)
}
  0x53   :  { %258 = dma.vmem_to_hbm [thread:$0]  %s253_s1, 512, %s392_s2, [#allocation5], %s353_s12, %s353_s12, %s354_s13  }
  0x54   :  { %350 = dma.done.wait [#allocation5], 512  }
  0x55   :  { %351 = vsyncadd [#allocation5], 4294966784 }
  0x56   :  { %262 = vsyncpa [#allocation4], 1 }
  0x57   :  { %263 = vsyncpa [#allocation7], 1 }
  0x58   :  { %264 = vsyncpa [#allocation5], 1 }

</bundles_post_ra>
